<compile_context>
chip_gen: v7x
topology: tpu7x:2x2x1
jax: 0.10.0
libtpu: 0.0.40
codegen_flags: <defaults>
</compile_context>

<pallas_src>
import jax
import jax.numpy as jnp
from jax.experimental import pallas as pl
from jax.experimental.pallas import tpu as pltpu


def _cdiv(a: int, b: int) -> int:
    return -(-a // b)


def _softmax_stable_kernel(m_ref, x_ref, o_ref):
    # m_ref: (1, 1) f32 global max in SMEM (hoisted into the wrapper).
    # x_ref / o_ref: (dim0, TILE_N) VMEM tiles; dim 0 is fully resident, so the
    # dim-0 sum is local to this tile and tiles are independent of each other.
    x = x_ref[...].astype(jnp.float32)            # f32 compute, late cast
    e = jnp.exp(x - m_ref[0, 0])                  # EUP exp
    s = jnp.sum(e, axis=0, keepdims=True)         # per-column sum over dim 0
    inv = pl.reciprocal(s, approx=False)          # EUP reciprocal (exact)
    o_ref[...] = (e * inv).astype(o_ref.dtype)    # VPU multiply, single cast


def _pick_tiling(d0: int, d1: int, itemsize: int,
                 vmem_budget_bytes: int = 12 * 1024 * 1024):
    """Return (tile_n, padded_d1): lane-dense tile width and padded dim-1 size."""
    # VMEM per tile column: double-buffered in+out tiles in the native dtype
    # plus ~3 f32 temporaries (x_f32, e, e*inv) the compiler keeps in VMEM.
    # TODO(synk): for very tall inputs (d0 so large that a single (d0, 128) tile
    # exceeds this budget) a two-pass reduction over dim 0 would be needed.
    bytes_per_col = d0 * (4 * itemsize + 3 * 4)
    k_budget = max(int(vmem_budget_bytes // (bytes_per_col * 128)), 1)
    n_groups = _cdiv(d1, 128)
    k_budget = min(k_budget, n_groups)

    if d1 % 128 == 0:
        # Prefer a tile width that divides d1 exactly: skips the pad/slice
        # copies in the wrapper entirely.  Don't accept a pathologically small
        # tile (keeps per-step overhead amortized).
        min_ok = max(k_budget // 4, 1)
        for k in range(k_budget, min_ok - 1, -1):
            if n_groups % k == 0:
                return 128 * k, d1

    tile_n = 128 * k_budget
    padded_d1 = _cdiv(d1, tile_n) * tile_n
    return tile_n, padded_d1


def _softmax_stable_2d(arr: jax.Array) -> jax.Array:
    d0, d1 = arr.shape

    # 1) global scalar max (faithful to the PyTorch module), one streamed pass.
    m = jnp.max(arr.astype(jnp.float32)).reshape(1, 1)

    # 2) lane-dense tiling along dim 1 only (the non-reduced axis).
    tile_n, padded_d1 = _pick_tiling(d0, d1, arr.dtype.itemsize)
    x = arr if padded_d1 == d1 else jnp.pad(arr, ((0, 0), (0, padded_d1 - d1)))

    grid = (padded_d1 // tile_n,)

    out = pl.pallas_call(
        _softmax_stable_kernel,
        out_shape=jax.ShapeDtypeStruct((d0, padded_d1), arr.dtype),
        grid_spec=pltpu.PrefetchScalarGridSpec(
            num_scalar_prefetch=0,
            grid=grid,
            in_specs=[
                pl.BlockSpec(memory_space=pltpu.MemorySpace.SMEM),   # global max
                pl.BlockSpec((d0, tile_n), lambda j: (0, j)),        # x tile
            ],
            out_specs=pl.BlockSpec((d0, tile_n), lambda j: (0, j)),
        ),
        compiler_params=pltpu.CompilerParams(
            # dim-1 tiles are independent once the max is an SMEM scalar:
            # shard the grid across TensorCores where the part has >1 TC.
            dimension_semantics=("parallel",),
        ),
    )(m, x)

    return out if padded_d1 == d1 else out[:, :d1]


def softmax_stable(arr: jax.Array) -> jax.Array:
    """Pallas implementation of SoftmaxStable.forward for any rank >= 1.

    Semantics: exp(arr - max(arr)) / sum_over_dim0(exp(arr - max(arr))).
    NOTE: for genuinely tiny inputs the pallas_call launch overhead dominates;
    hot paths with tiny shapes should just use the plain-jnp expression.
    """
    if arr.ndim == 0:
        raise ValueError("SoftmaxStable needs at least one dimension")
    if arr.ndim == 1:
        return _softmax_stable_2d(arr.reshape(arr.shape[0], 1)).reshape(arr.shape)
    if arr.ndim == 2:
        return _softmax_stable_2d(arr)
    # N-D: dim 0 stays, all trailing dims flatten onto the lane axis (free
    # row-major reshape); identical to the PyTorch broadcast over dim 0.
    return _softmax_stable_2d(arr.reshape(arr.shape[0], -1)).reshape(arr.shape)


if __name__ == "__main__":
    key = jax.random.PRNGKey(0)

    def ref_softmax_stable(x):
        e = jnp.exp(x - jnp.max(x))
        return e / jnp.sum(e, axis=0)

    k1, k2, k3 = jax.random.split(key, 3)
    cases = [
        jax.random.normal(k1, (8, 32), dtype=jnp.float32),    # seq=8, hidden=32 (pad path)
        jax.random.normal(k2, (16, 384), dtype=jnp.float32),  # 128-aligned (no-pad path)
        jax.random.normal(k3, (4, 4, 8), dtype=jnp.float32),  # N-D path
    ]

    for x in cases:
        out = jax.block_until_ready(softmax_stable(x))
        ref = ref_softmax_stable(x)
        assert out.shape == x.shape and out.dtype == x.dtype, x.shape
        assert jnp.allclose(out, ref, atol=1e-6, rtol=1e-5), x.shape

    print("KERNEL_OK")
</pallas_src>

<mosaic_0001>
module attributes {stable_mosaic.version = 11 : i64} {
  func.func @_softmax_stable_kernel(%arg0: i32, %arg1: memref<1x1xf32, #tpu.memory_space<smem>>, %arg2: memref<8x128xf32, #tpu.memory_space<vmem>>, %arg3: memref<8x128xf32, #tpu.memory_space<vmem>>) attributes {dimension_semantics = [#tpu.dimension_semantics<parallel>], iteration_bounds = array<i64: 1>, scalar_prefetch = 0 : i64, scratch_operands = 0 : i64, tpu.core_type = #tpu.core_type<tc>, window_params = [{transform_indices = @transform_0, window_bounds = array<i64: 1, 1>}, {transform_indices = @transform_1, window_bounds = array<i64: 8, 128>}, {transform_indices = @transform_2, window_bounds = array<i64: 8, 128>}]} {
    %c0 = arith.constant 0 : index
    %c0_0 = arith.constant 0 : index
    %0 = vector.load %arg2[%c0, %c0_0] : memref<8x128xf32, #tpu.memory_space<vmem>>, vector<8x128xf32>
    %c0_1 = arith.constant 0 : index
    %c0_2 = arith.constant 0 : index
    %1 = memref.load %arg1[%c0_1, %c0_2] : memref<1x1xf32, #tpu.memory_space<smem>>
    %2 = vector.broadcast %1 : f32 to vector<8x128xf32>
    %3 = arith.subf %0, %2 : vector<8x128xf32>
    %4 = math.exp %3 : vector<8x128xf32>
    %cst = arith.constant dense<0.000000e+00> : vector<128xf32>
    %5 = vector.multi_reduction <add>, %4, %cst [0] : vector<8x128xf32> to vector<128xf32>
    %6 = vector.shape_cast %5 : vector<128xf32> to vector<1x128xf32>
    %7 = tpu.reciprocal %6 : vector<1x128xf32> -> vector<1x128xf32>
    %8 = vector.broadcast %7 : vector<1x128xf32> to vector<8x128xf32>
    %9 = arith.mulf %4, %8 : vector<8x128xf32>
    %c0_3 = arith.constant 0 : index
    %c0_4 = arith.constant 0 : index
    %10 = vector.load %arg3[%c0_3, %c0_4] : memref<8x128xf32, #tpu.memory_space<vmem>>, vector<8x128xf32>
    tpu.vector_store %arg3[%c0_3, %c0_4], %9 {strides = array<i32>} : memref<8x128xf32, #tpu.memory_space<vmem>>, vector<8x128xf32>,
    return
  }
  func.func @transform_0(%arg0: i32) -> (i32, i32) {
    %c0_i32 = arith.constant 0 : i32
    %c0_i32_0 = arith.constant 0 : i32
    %c0_i32_1 = arith.constant 0 : i32
    return %c0_i32, %c0_i32_0 : i32, i32
  }
  func.func @transform_1(%arg0: i32) -> (i32, i32) {
    %c0_i32 = arith.constant 0 : i32
    %c0_i32_0 = arith.constant 0 : i32
    return %c0_i32, %arg0 : i32, i32
  }
  func.func @transform_2(%arg0: i32) -> (i32, i32) {
    %c0_i32 = arith.constant 0 : i32
    %c0_i32_0 = arith.constant 0 : i32
    return %c0_i32, %arg0 : i32, i32
  }
}

</mosaic_0001>

<bundles_post_ra>
// kernel: tpu_custom_call.1
= control target key start
LH: loop header
LB: loop body
LE: loop exit
PB: predicated region body
PF: predicated region fallthrough
CT: control target
= control target key end

     0   :  { %8 = vsyncpa [#allocation4], 0  ;;  %s153_s0 = inlined_call_operand.<no memory space> [shape: f32[1,1], index: 0, kind: input, shape index: {}]   ;;  %s154_s1 = inlined_call_operand.hbm [shape: f32[8,128], index: 1, kind: input, shape index: {}]   ;;  %s155_s2 = inlined_call_operand.hbm [shape: f32[8,128], index: 2, kind: output, shape index: {}]  }
   0x1   :  { %9 = vsyncpa [#allocation5], 0  ;;  %s109_s9 = smov [#allocation3]   ;;  %s61_s13 = scalar_lea.hbm %s154_s1, 128 }
   0x2   :  { %s18_s10 = sshll.u32 %s109_s9, 4  ;;  %p62_p0 = scmp.ne.s32.totalorder %s154_s1, %s61_s13  ;;  %s19_s10 = int_to_ptr.vmem [resolvable:$true] %s18_s10 }
   0x3   :  { %p65_p1 = scmp.lt.u32.totalorder %s61_s13, %s154_s1 }
   0x5   :  { %p67_p2 = pnand %p65_p1, %p62_p0 }
   0x7   :  { %70 = shalt.err (!%p67_p2)
}
   0x8   :  { %s71_s18 = scalar_lea.vmem %s19_s10, 128  ;;  %p76_p4 = scmp.lt.s32.totalorder %s19_s10, %s19_s10 }
   0x9   :  { %p72_p3 = scmp.ne.s32.totalorder %s19_s10, %s71_s18  ;;  %p77_p5 = scmp.lt.s32.totalorder %s71_s18, %s71_s18 }
   0xb   :  { %p78_p6 = por %p77_p5, %p76_p4 }
   0xd   :  { %p79_p7 = pnand %p78_p6, %p72_p3 }
   0xf   :  { %82 = shalt.err (!%p79_p7)
}
  0x10   :  { %21 = dma.hbm_to_vmem [thread:$0]  %s154_s1, 128, %s19_s10, [#allocation4]  }
  0x11   :  { %105 = dma.done.wait [#allocation4], 128  }
  0x12   :  { %106 = vsyncadd [#allocation4], 4294967168  ;;  %v27_v0 = vstv %s153_s0  ;;  %v25_v1 = vld [vmem:[#allocation3] sm:$0xff]  ;;  %s110_s23 = smov [#allocation6]  }
  0x13   :  { %v28_v2 = vsub.f32 %v25_v1, %v27_v0  ;;  %s46_s1 = sshll.u32 %s110_s23, 4  ;;  %s47_s1 = int_to_ptr.vmem [resolvable:$true] %s46_s1 }
  0x14   :  { %s83_s24 = scalar_lea.vmem %s47_s1, 128  ;;  %p88_p9 = scmp.lt.s32.totalorder %s47_s1, %s47_s1 }
  0x15   :  { %v29_v3 = vmul.f32 1.442695, %v28_v2  ;;  %p84_p8 = scmp.ne.s32.totalorder %s47_s1, %s83_s24  ;;  %p89_p10 = scmp.lt.s32.totalorder %s83_s24, %s83_s24 }
  0x17   :  { %57 = vpow2.f32 %v29_v3  ;;  %p90_p11 = por %p89_p10, %p88_p9 }
  0x19   :  { %p91_p12 = pnand %p90_p11, %p84_p8 }
  0x21   :  { %v58_v4 = vpop.eup %57 }
  0x22   :  { %v31_v5 = vrot.slane %v58_v4, 4 }
  0x24   :  { %v32_v6 = vadd.f32 %v58_v4, %v31_v5 }
  0x26   :  { %v33_v7 = vrot.slane %v32_v6, 2 }
  0x28   :  { %v34_v8 = vadd.f32 %v33_v7, %v32_v6 }
  0x2a   :  { %v35_v9 = vrot.slane %v34_v8, 1 }
  0x2c   :  { %v36_v10 = vadd.f32 %v35_v9, %v34_v8 }
  0x2e   :  { %59 = vrcp.f32 %v36_v10 }
  0x38   :  { %v60_v11 = vpop.eup %59 }
  0x39   :  { %v38_v12 = vmul.f32 %v60_v11, %v58_v4 }
  0x3b   :  { %39 = vst [vmem:[#allocation6] sm:$0xff] %v38_v12 }
  0x3c   :  { %94 = shalt.err (!%p91_p12)
}
  0x3d   :  { %s95_s26 = scalar_lea.hbm %s155_s2, 128 }
  0x3e   :  { %p96_p13 = scmp.ne.s32.totalorder %s155_s2, %s95_s26  ;;  %p99_p0 = scmp.lt.u32.totalorder %s95_s26, %s155_s2 }
  0x40   :  { %p101_p1 = pnand %p99_p0, %p96_p13 }
  0x42   :  { %104 = shalt.err (!%p101_p1)
}
  0x43   :  { %49 = dma.vmem_to_hbm [thread:$0]  %s47_s1, 128, %s155_s2, [#allocation5]  }
  0x44   :  { %107 = dma.done.wait [#allocation5], 128  }
  0x45   :  { %108 = vsyncadd [#allocation5], 4294967168 }
  0x46   :  { %53 = vsyncpa [#allocation4], 1 }
  0x47   :  { %54 = vsyncpa [#allocation5], 1 }

</bundles_post_ra>
